<compile_context>
chip_gen: v7x
topology: tpu7x:2x2x1
jax: 0.10.0
libtpu: 0.0.40
codegen_flags: <defaults>
</compile_context>

<pallas_src>
import functools

import jax
import jax.numpy as jnp
from jax.experimental import pallas as pl
from jax.experimental.pallas import tpu as pltpu

IGNORE_INDEX = -100


def _round_up(x, m):
    return ((x + m - 1) // m) * m


def _cdiv(a, b):
    return (a + b - 1) // b


def _ce_kernel(logits_ref, labels_ref, nll_ref, m_ref, l_ref, p_ref,
               *, v_total, ignore_index):
    # logits_ref: (TM, TV) stored dtype   labels_ref: (TM, 1) i32
    # nll_ref:    (TM, 1) f32 (per-row NLL, 0 for ignored rows)
    # m_ref/l_ref/p_ref: (TM, 1) f32 VMEM scratch (running max / exp-sum / picked logit)
    vk = pl.program_id(1)
    n_vk = pl.num_programs(1)

    @pl.when(vk == 0)
    def _init():
        m_ref[...] = jnp.full_like(m_ref, -jnp.inf)
        l_ref[...] = jnp.zeros_like(l_ref)
        p_ref[...] = jnp.zeros_like(p_ref)

    x = logits_ref[...].astype(jnp.float32)          # cast bf16/f32 -> f32 (free VPU op)
    lab = labels_ref[...]                            # (TM, 1) i32
    tm, tv = x.shape

    # Global vocab column index of each lane in this tile.
    col = jax.lax.broadcasted_iota(jnp.int32, (tm, tv), 1) + vk * tv
    # Mask padded vocab columns (only matters when V is not a multiple of TV).
    x = jnp.where(col < v_total, x, -jnp.inf)

    # --- online softmax update (running max / rescaled exp-sum) ---
    m_prev = m_ref[...]
    m_tile = jnp.max(x, axis=-1, keepdims=True)
    m_new = jnp.maximum(m_prev, m_tile)
    alpha = jnp.exp(m_prev - m_new)
    l_ref[...] = alpha * l_ref[...] + jnp.sum(jnp.exp(x - m_new), axis=-1, keepdims=True)
    m_ref[...] = m_new

    # --- gather the logit at the target label (VPU iota one-hot) ---
    hit = col == lab                                  # (TM, TV) bool
    p_ref[...] = p_ref[...] + jnp.sum(jnp.where(hit, x, 0.0), axis=-1, keepdims=True)

    @pl.when(vk == n_vk - 1)
    def _finalize():
        lse = m_ref[...] + jnp.log(l_ref[...])        # (TM, 1)
        valid = lab != ignore_index
        nll_ref[...] = jnp.where(valid, lse - p_ref[...], 0.0)


def gpt_lm_loss(logits, labels, *, tm=None, tv=None, vmem_limit_bytes=None):
    """Pallas implementation of GPTLMLoss.forward(logits, labels) -> scalar loss."""
    b, s, v = logits.shape
    n = b * s

    # Sequence shift expressed on the labels only (tiny array, no logits copy):
    # row t of logits pairs with labels[:, t+1]; the last row of each sequence
    # is dropped by marking it ignore_index.
    shift_labels = jnp.concatenate(
        [labels[:, 1:].astype(jnp.int32),
         jnp.full((b, 1), IGNORE_INDEX, dtype=jnp.int32)], axis=1)        # (B, S)

    logits2d = logits.reshape(n, v)              # bitcast reshape, keeps stored dtype
    labels2d = shift_labels.reshape(n, 1)        # (N, 1) i32

    # --- tile selection (legal: rows multiple of 8, lanes multiple of 128 or == V) ---
    if tm is None:
        tm = min(256, _round_up(n, 8))
    tm = max(8, _round_up(tm, 8))
    if tv is None:
        tv = min(2048, v) if v % 128 == 0 else v
    if tv != v:
        tv = _round_up(tv, 128)

    n_row_tiles = _cdiv(n, tm)
    n_vocab_tiles = _cdiv(v, tv)
    n_pad = n_row_tiles * tm

    # Pad labels to a whole number of row tiles with ignore_index so edge-padded
    # logits rows are masked out; logits themselves are never copied or padded.
    if n_pad > n:
        labels2d = jnp.concatenate(
            [labels2d, jnp.full((n_pad - n, 1), IGNORE_INDEX, dtype=jnp.int32)], axis=0)

    if vmem_limit_bytes is None:
        tile_bytes = tm * tv * jnp.dtype(logits.dtype).itemsize
        # room for double-buffered logits + small blocks/scratch; capped for v7x.
        vmem_limit_bytes = int(min(60 * 2**20, max(16 * 2**20, 6 * tile_bytes)))

    kernel = functools.partial(_ce_kernel, v_total=v, ignore_index=IGNORE_INDEX)

    nll = pl.pallas_call(
        kernel,
        out_shape=jax.ShapeDtypeStruct((n_pad, 1), jnp.float32),
        grid_spec=pltpu.PrefetchScalarGridSpec(
            num_scalar_prefetch=0,
            grid=(n_row_tiles, n_vocab_tiles),
            in_specs=[
                pl.BlockSpec((tm, tv), lambda i, k: (i, k)),   # logits tile
                pl.BlockSpec((tm, 1), lambda i, k: (i, 0)),    # labels tile
            ],
            out_specs=pl.BlockSpec((tm, 1), lambda i, k: (i, 0)),
            scratch_shapes=[
                pltpu.VMEM((tm, 1), jnp.float32),   # running max
                pltpu.VMEM((tm, 1), jnp.float32),   # running exp-sum
                pltpu.VMEM((tm, 1), jnp.float32),   # picked logit
            ],
        ),
        compiler_params=pltpu.CompilerParams(
            dimension_semantics=("parallel", "arbitrary"),
            vmem_limit_bytes=vmem_limit_bytes,
        ),
    )(logits2d, labels2d)

    # Tiny final reduction in the wrapper (keeps the row-tile axis fully parallel).
    count = jnp.sum((labels2d != IGNORE_INDEX).astype(jnp.float32))
    return jnp.sum(nll) / count      # 0/0 -> NaN if no valid tokens (matches PyTorch)


# ----------------------- pure-JAX reference -----------------------
def gpt_lm_loss_ref(logits, labels):
    b, s, v = logits.shape
    sl = logits[:, :-1, :].reshape(-1, v).astype(jnp.float32)
    st = labels[:, 1:].reshape(-1).astype(jnp.int32)
    lse = jax.scipy.special.logsumexp(sl, axis=-1)
    picked = jnp.take_along_axis(sl, jnp.clip(st, 0, v - 1)[:, None], axis=-1)[:, 0]
    valid = st != IGNORE_INDEX
    per = jnp.where(valid, lse - picked, 0.0)
    return jnp.sum(per) / jnp.sum(valid.astype(jnp.float32))


if __name__ == "__main__":
    key = jax.random.PRNGKey(0)
    k1, k2 = jax.random.split(key)

    B, S, V = 2, 8, 256
    logits = jax.random.normal(k1, (B, S, V), jnp.float32)
    labels = jax.random.randint(k2, (B, S), 0, V, dtype=jnp.int32)

    # small tiles so the test exercises multiple row tiles AND the online-softmax
    # accumulation across multiple vocab tiles (grid = (2, 2))
    loss = jax.block_until_ready(gpt_lm_loss(logits, labels, tm=8, tv=128))
    ref = gpt_lm_loss_ref(logits, labels)
    assert loss.shape == ()
    assert jnp.allclose(loss, ref, atol=1e-5, rtol=1e-5), (loss, ref)

    # bf16 logits path: loaded in stored dtype, cast to f32 inside the kernel
    logits_bf16 = logits.astype(jnp.bfloat16)
    loss_bf = jax.block_until_ready(gpt_lm_loss(logits_bf16, labels, tm=8, tv=128))
    ref_bf = gpt_lm_loss_ref(logits_bf16, labels)
    assert jnp.allclose(loss_bf, ref_bf, atol=1e-3, rtol=1e-3), (loss_bf, ref_bf)

    print("KERNEL_OK")
</pallas_src>

<mosaic_0001>
module attributes {stable_mosaic.version = 11 : i64} {
  func.func @_ce_kernel(%arg0: i32, %arg1: i32, %arg2: memref<8x128xf32, #tpu.memory_space<vmem>>, %arg3: memref<8x1xi32, #tpu.memory_space<vmem>>, %arg4: memref<8x1xf32, #tpu.memory_space<vmem>>, %arg5: memref<8x1xf32, #tpu.memory_space<vmem>>, %arg6: memref<8x1xf32, #tpu.memory_space<vmem>>, %arg7: memref<8x1xf32, #tpu.memory_space<vmem>>) attributes {dimension_semantics = [#tpu.dimension_semantics<parallel>, #tpu.dimension_semantics<arbitrary>], iteration_bounds = array<i64: 2, 2>, scalar_prefetch = 0 : i64, scratch_operands = 3 : i64, tpu.core_type = #tpu.core_type<tc>, window_params = [{transform_indices = @transform_0, window_bounds = array<i64: 8, 128>}, {transform_indices = @transform_1, window_bounds = array<i64: 8, 1>}, {transform_indices = @transform_2, window_bounds = array<i64: 8, 1>}]} {
    %c0_i32 = arith.constant 0 : i32
    %0 = arith.cmpi eq, %arg1, %c0_i32 : i32
    %1 = arith.extui %0 : i1 to i32
    %c0_i32_0 = arith.constant 0 : i32
    %2 = arith.cmpi ne, %1, %c0_i32_0 : i32
    scf.if %2 {
      %cst_21 = arith.constant 0xFF800000 : f32
      %41 = vector.broadcast %cst_21 : f32 to vector<8x1xf32>
      %c0_22 = arith.constant 0 : index
      %c0_23 = arith.constant 0 : index
      %42 = vector.load %arg5[%c0_22, %c0_23] : memref<8x1xf32, #tpu.memory_space<vmem>>, vector<8x1xf32>
      tpu.vector_store %arg5[%c0_22, %c0_23], %41 {strides = array<i32>} : memref<8x1xf32, #tpu.memory_space<vmem>>, vector<8x1xf32>,
      %cst_24 = arith.constant 0.000000e+00 : f32
      %43 = vector.broadcast %cst_24 : f32 to vector<8x1xf32>
      %c0_25 = arith.constant 0 : index
      %c0_26 = arith.constant 0 : index
      %44 = vector.load %arg6[%c0_25, %c0_26] : memref<8x1xf32, #tpu.memory_space<vmem>>, vector<8x1xf32>
      tpu.vector_store %arg6[%c0_25, %c0_26], %43 {strides = array<i32>} : memref<8x1xf32, #tpu.memory_space<vmem>>, vector<8x1xf32>,
      %cst_27 = arith.constant 0.000000e+00 : f32
      %45 = vector.broadcast %cst_27 : f32 to vector<8x1xf32>
      %c0_28 = arith.constant 0 : index
      %c0_29 = arith.constant 0 : index
      %46 = vector.load %arg7[%c0_28, %c0_29] : memref<8x1xf32, #tpu.memory_space<vmem>>, vector<8x1xf32>
      tpu.vector_store %arg7[%c0_28, %c0_29], %45 {strides = array<i32>} : memref<8x1xf32, #tpu.memory_space<vmem>>, vector<8x1xf32>,
    } else {
    }
    %c0 = arith.constant 0 : index
    %c0_1 = arith.constant 0 : index
    %3 = vector.load %arg2[%c0, %c0_1] : memref<8x128xf32, #tpu.memory_space<vmem>>, vector<8x128xf32>
    %c0_2 = arith.constant 0 : index
    %c0_3 = arith.constant 0 : index
    %4 = vector.load %arg3[%c0_2, %c0_3] : memref<8x1xi32, #tpu.memory_space<vmem>>, vector<8x1xi32>
    %5 = tpu.iota {dimensions = array<i32: 1>} : vector<8x128xi32>
    %c128_i32 = arith.constant 128 : i32
    %6 = arith.muli %arg1, %c128_i32 : i32
    %7 = vector.broadcast %6 : i32 to vector<8x128xi32>
    %8 = arith.addi %5, %7 : vector<8x128xi32>
    %c256_i32 = arith.constant 256 : i32
    %9 = vector.broadcast %c256_i32 : i32 to vector<8x128xi32>
    %10 = arith.cmpi slt, %8, %9 : vector<8x128xi32>
    %cst = arith.constant 0xFF800000 : f32
    %11 = vector.broadcast %cst : f32 to vector<8x128xf32>
    %12 = arith.select %10, %3, %11 : vector<8x128xi1>, vector<8x128xf32>
    %c0_4 = arith.constant 0 : index
    %c0_5 = arith.constant 0 : index
    %13 = vector.load %arg5[%c0_4, %c0_5] : memref<8x1xf32, #tpu.memory_space<vmem>>, vector<8x1xf32>
    %cst_6 = arith.constant dense<0xFF800000> : vector<8xf32>
    %14 = vector.multi_reduction <maximumf>, %12, %cst_6 [1] : vector<8x128xf32> to vector<8xf32>
    %15 = vector.shape_cast %14 : vector<8xf32> to vector<8x1xf32>
    %16 = arith.maximumf %13, %15 : vector<8x1xf32>
    %17 = arith.subf %13, %16 : vector<8x1xf32>
    %18 = math.exp %17 : vector<8x1xf32>
    %c0_7 = arith.constant 0 : index
    %c0_8 = arith.constant 0 : index
    %19 = vector.load %arg6[%c0_7, %c0_8] : memref<8x1xf32, #tpu.memory_space<vmem>>, vector<8x1xf32>
    %20 = arith.mulf %18, %19 : vector<8x1xf32>
    %21 = vector.broadcast %16 : vector<8x1xf32> to vector<8x128xf32>
    %22 = arith.subf %12, %21 : vector<8x128xf32>
    %23 = math.exp %22 : vector<8x128xf32>
    %cst_9 = arith.constant dense<0.000000e+00> : vector<8xf32>
    %24 = vector.multi_reduction <add>, %23, %cst_9 [1] : vector<8x128xf32> to vector<8xf32>
    %25 = vector.shape_cast %24 : vector<8xf32> to vector<8x1xf32>
    %26 = arith.addf %20, %25 : vector<8x1xf32>
    %c0_10 = arith.constant 0 : index
    %c0_11 = arith.constant 0 : index
    %27 = vector.load %arg6[%c0_10, %c0_11] : memref<8x1xf32, #tpu.memory_space<vmem>>, vector<8x1xf32>
    tpu.vector_store %arg6[%c0_10, %c0_11], %26 {strides = array<i32>} : memref<8x1xf32, #tpu.memory_space<vmem>>, vector<8x1xf32>,
    %c0_12 = arith.constant 0 : index
    %c0_13 = arith.constant 0 : index
    %28 = vector.load %arg5[%c0_12, %c0_13] : memref<8x1xf32, #tpu.memory_space<vmem>>, vector<8x1xf32>
    tpu.vector_store %arg5[%c0_12, %c0_13], %16 {strides = array<i32>} : memref<8x1xf32, #tpu.memory_space<vmem>>, vector<8x1xf32>,
    %29 = vector.broadcast %4 : vector<8x1xi32> to vector<8x128xi32>
    %30 = arith.cmpi eq, %8, %29 : vector<8x128xi32>
    %c0_14 = arith.constant 0 : index
    %c0_15 = arith.constant 0 : index
    %31 = vector.load %arg7[%c0_14, %c0_15] : memref<8x1xf32, #tpu.memory_space<vmem>>, vector<8x1xf32>
    %cst_16 = arith.constant 0.000000e+00 : f32
    %32 = vector.broadcast %cst_16 : f32 to vector<8x128xf32>
    %33 = arith.select %30, %12, %32 : vector<8x128xi1>, vector<8x128xf32>
    %cst_17 = arith.constant dense<0.000000e+00> : vector<8xf32>
    %34 = vector.multi_reduction <add>, %33, %cst_17 [1] : vector<8x128xf32> to vector<8xf32>
    %35 = vector.shape_cast %34 : vector<8xf32> to vector<8x1xf32>
    %36 = arith.addf %31, %35 : vector<8x1xf32>
    %c0_18 = arith.constant 0 : index
    %c0_19 = arith.constant 0 : index
    %37 = vector.load %arg7[%c0_18, %c0_19] : memref<8x1xf32, #tpu.memory_space<vmem>>, vector<8x1xf32>
    tpu.vector_store %arg7[%c0_18, %c0_19], %36 {strides = array<i32>} : memref<8x1xf32, #tpu.memory_space<vmem>>, vector<8x1xf32>,
    %c1_i32 = arith.constant 1 : i32
    %38 = arith.cmpi eq, %arg1, %c1_i32 : i32
    %39 = arith.extui %38 : i1 to i32
    %c0_i32_20 = arith.constant 0 : i32
    %40 = arith.cmpi ne, %39, %c0_i32_20 : i32
    scf.if %40 {
      %c0_21 = arith.constant 0 : index
      %c0_22 = arith.constant 0 : index
      %41 = vector.load %arg5[%c0_21, %c0_22] : memref<8x1xf32, #tpu.memory_space<vmem>>, vector<8x1xf32>
      %c0_23 = arith.constant 0 : index
      %c0_24 = arith.constant 0 : index
      %42 = vector.load %arg6[%c0_23, %c0_24] : memref<8x1xf32, #tpu.memory_space<vmem>>, vector<8x1xf32>
      %43 = math.log %42 : vector<8x1xf32>
      %44 = arith.addf %41, %43 : vector<8x1xf32>
      %c-100_i32 = arith.constant -100 : i32
      %45 = vector.broadcast %c-100_i32 : i32 to vector<8x1xi32>
      %46 = arith.cmpi ne, %4, %45 : vector<8x1xi32>
      %c0_25 = arith.constant 0 : index
      %c0_26 = arith.constant 0 : index
      %47 = vector.load %arg7[%c0_25, %c0_26] : memref<8x1xf32, #tpu.memory_space<vmem>>, vector<8x1xf32>
      %48 = arith.subf %44, %47 : vector<8x1xf32>
      %cst_27 = arith.constant 0.000000e+00 : f32
      %49 = vector.broadcast %cst_27 : f32 to vector<8x1xf32>
      %50 = arith.select %46, %48, %49 : vector<8x1xi1>, vector<8x1xf32>
      %c0_28 = arith.constant 0 : index
      %c0_29 = arith.constant 0 : index
      %51 = vector.load %arg4[%c0_28, %c0_29] : memref<8x1xf32, #tpu.memory_space<vmem>>, vector<8x1xf32>
      tpu.vector_store %arg4[%c0_28, %c0_29], %50 {strides = array<i32>} : memref<8x1xf32, #tpu.memory_space<vmem>>, vector<8x1xf32>,
    } else {
    }
    return
  }
  func.func @transform_0(%arg0: i32, %arg1: i32) -> (i32, i32) {
    %c0_i32 = arith.constant 0 : i32
    return %arg0, %arg1 : i32, i32
  }
  func.func @transform_1(%arg0: i32, %arg1: i32) -> (i32, i32) {
    %c0_i32 = arith.constant 0 : i32
    %c0_i32_0 = arith.constant 0 : i32
    return %arg0, %c0_i32 : i32, i32
  }
  func.func @transform_2(%arg0: i32, %arg1: i32) -> (i32, i32) {
    %c0_i32 = arith.constant 0 : i32
    %c0_i32_0 = arith.constant 0 : i32
    return %arg0, %c0_i32 : i32, i32
  }
}

</mosaic_0001>

<bundles_post_ra>
// kernel: tpu_custom_call.1
= control target key start
LH: loop header
LB: loop body
LE: loop exit
PB: predicated region body
PF: predicated region fallthrough
CT: control target
= control target key end

     0   :  { %7 = vsyncpa [#allocation6], 0  ;;  %s724_s0 = inlined_call_operand.hbm [shape: f32[16,256], index: 0, kind: input, shape index: {}]   ;;  %s725_s1 = inlined_call_operand.vmem [shape: s32[16,1], index: 1, kind: input, shape index: {}]   ;;  %s726_s2 = inlined_call_operand.vmem [shape: f32[16,1], index: 2, kind: output, shape index: {}]  }
   0x1   :  { %9 = vsyncpa [#allocation6 + $0x1], 0  ;;  %s561_s9 = smov 0   ;;  %s563_s10 = smov 0  }
   0x2   :  { %s565_s11 = smov 0   ;;  %s567_s12 = smov 0  }
   0x3   :  { %s569_s13 = smov 0   ;;  %s571_s14 = smov 0  }
   0x4   :  { %s573_s15 = smov 0   ;;  %s575_s16 = smov 0  }
   0x5 LB: > { %s346_s17 = sadd.s32 4294967295, %s540_s16   ;;  %s24_s18 = sadd.s32 1, %s532_s14  ;;  %s540_s16 = sphi %s575_s16, %s15_s16   ;;  %s536_s15 = sphi %s573_s15, %s738_s15   ;;  %s532_s14 = sphi %s571_s14, %s737_s14   ;;  %s528_s13 = sphi %s569_s13, %s736_s13   ;;  %s524_s12 = sphi %s567_s12, %s735_s12   ;;  %s520_s11 = sphi %s565_s11, %s734_s11   ;;  %s516_s10 = sphi %s563_s10, %s733_s10   ;;  %s512_s9 = sphi %s561_s9, %s732_s9  }
   0x6   : > { %p25_p0 = scmp.ge.s32.totalorder %s24_s18, 2  ;;  %s27_s19 = sadd.s32 1, %s536_s15 }
   0x7   : > { %s36_s20 = sadd.s32 1, %s520_s11  ;;  %p43_p1 = scmp.ne.s32.totalorder %s520_s11, %s516_s10 }
   0x8   : > { %s740_s18 = smov (%p25_p0, %s24_s18), 0  ;;  %s742_s19 = smov (!%p25_p0, %s27_s19), %s536_s15 }
   0x9   : > { %s32_s21 = ssub.s32 %s532_s14, %s740_s18  ;;  %p44_p2 = scmp.eq.s32.totalorder %s540_s16, 0 }
   0xa   : > { %p29_p3 = scmp.ge.s32.totalorder %s742_s19, 2  ;;  %p49_p4 = scmp.ne.s32.totalorder %s516_s10, %s512_s9 }
   0xb   : > { %p612_p5 = por %p44_p2, %p43_p1  ;;  %p50_p6 = scmp.eq.s32.totalorder %s346_s17, 0 }
   0xc   : > { %s744_s19 = smov (%p29_p3, %s742_s19), 0  ;;  %p368_p8 = scmp.lt.s32.totalorder %s540_s16, 4 }
   0xd   : > { %p618_p7 = por %p50_p6, %p49_p4  ;;  %s31_s24 = ssub.s32 %s536_s15, %s744_s19 }
   0xe   : > { %s33_s25 = sor.u32 %s32_s21, %s31_s24  ;;  %s125_s26 = sand.u32 1, %s520_s11  }
   0xf   : > { %p34_p9 = scmp.eq.s32.totalorder %s33_s25, 0  ;;  %s350_s27 = sshll.u32 %s125_s26, 3 }
  0x10   : > { %s351_s28 = sshll.u32 %s536_s15, 1  ;;  %s129_s4 = scalar_lea.vmem [#allocation5], %s350_s27 }
  0x11   : > { %s628_s29 = scalar_select %p34_p9, %s520_s11, %s36_s20  }
  0x12   : > { %s134_s30 = sadd.s32 %s532_s14, %s351_s28  ;;  %s138_s5 = sshll.u32 %s129_s4, 4  ;;  %s636_s5 = int_to_ptr.vmem [resolvable:$true] %s138_s5 }
  0x13   : > { %s352_s3 = sshll.u32 %s134_s30, 7  ;;  %p642_p10 = pnand %p368_p8, %p612_p5 }
  0x14   : > { %s634_s8 = scalar_lea.hbm %s724_s0, %s352_s3  ;;  %s126_s17 = scalar_lea.sflag [#allocation6], %s125_s26 }
  0x15   : > { %s444_s20 = scalar_lea.hbm %s634_s8, 128  ;;  %p446_p0 = pneg %p642_p10 }
  0x16   : > { %p445_p13 = scmp.ne.s32.totalorder %s634_s8, %s444_s20  ;;  %s449_s24 = scalar_lea.hbm %s724_s0, 512 }
  0x17   : > { %p450_p3 = scmp.lt.u32.totalorder %s634_s8, %s724_s0  ;;  %p451_p4 = scmp.lt.u32.totalorder %s449_s24, %s444_s20 }
  0x18   : > { %p447_p1 = pnand %p446_p0, %p445_p13  ;;  %p453_p6 = scmp.lt.u32.totalorder %s444_s20, %s634_s8 }
  0x19   : > { %p452_p5 = por %p451_p4, %p450_p3 }
  0x1a   : > { %p448_p2 = pneg %p447_p1 }
  0x1b   : > { %p454_p8 = por %p453_p6, %p452_p5 }
  0x1d   : > { %p455_p9 = pnand %p454_p8, %p448_p2 }
  0x1f   : > { %458 = shalt.err (!%p455_p9)
}
  0x20   : > { %s459_s26 = scalar_lea.vmem %s636_s5, 128  ;;  %s542_s28 = smov [#allocation5]  }
  0x21   : > { %p460_p13 = scmp.ne.s32.totalorder %s636_s5, %s459_s26  ;;  %s464_s30 = sshll.u32 %s542_s28, 4  ;;  %s465_s30 = int_to_ptr.vmem [resolvable:$false] %s464_s30 }
  0x22   : > { %s466_s3 = scalar_lea.vmem %s465_s30, 256  ;;  %p467_p12 = scmp.lt.s32.totalorder %s636_s5, %s465_s30 }
  0x23   : > { %p462_p1 = pnand %p460_p13, %p446_p0  ;;  %p468_p3 = scmp.lt.s32.totalorder %s466_s3, %s459_s26 }
  0x25   : > { %p463_p11 = pneg %p462_p1  ;;  %p469_p4 = por %p468_p3, %p467_p12 }
  0x27   : > { %p470_p5 = pnand %p469_p4, %p463_p11 }
  0x29   : > { %473 = shalt.err (!%p470_p5)
}
  0x2a   : > { %367 = dma.hbm_to_vmem [thread:$0]  (!%p642_p10), %s634_s8, 128, %s636_s5, %s126_s17  }
  0x2b   : > { %p730_p2 = scmp.lt.s32.totalorder %s540_s16, 5  ;;  %p731_p6 = scmp.ge.s32.totalorder %s540_s16, 1 }
  0x2d   : > { %p151_p0 = pnand %p731_p6, %p730_p2 }
  0x2e   : > { %s156_s4 = sand.u32 (!%p151_p0), 1, %s516_s10  }
  0x2f   : > { %154 = sbr.rel (%p151_p0) target bundleno = 530 (0x212), region = 28  ;;  %s354_s6 = sshll.u32 (!%p151_p0), %s156_s4, 3 }
  0x30   : > { %s157_s7 = scalar_lea.sflag (!%p151_p0), [#allocation6], %s156_s4  ;;  %s160_s20 = scalar_lea.vmem (!%p151_p0), [#allocation5], %s354_s6 }
  0x36   : > { %507 = dma.done.wait (%p618_p7), %s157_s7, 128  }
  0x37   : > { %509 = vsyncadd (%p618_p7), %s157_s7, 4294967168  ;;  %p184_p11 = scmp.lt.s32.totalorder %s528_s13, 1  ;;  %p357_p10 = scmp.ne.s32.totalorder %s524_s12, 0 }
  0x38   : > { %vm196_vm0 = vcmask (!%p357_p10), 7168   ;;  %v543_v0 = vmov (!%p357_p10), -inf   ;;  %v544_v1 = vmov (!%p357_p10), 0.0  }
  0x39   : > { %s746_s13 = smov (!%p184_p11, %s528_s13), 1  ;;  %195 = sbr.rel (%p357_p10) target bundleno = 64 (0x40), region = 36 }
  0x3a   : > { %s355_s5 = sshll.u32 %s746_s13, 3  ;;  %197 = vst.msk [vmem:[#allocation2] sm:$0xff] (!%p357_p10), %vm196_vm0, %v543_v0  ;;  %198 = vst.msk [vmem:[#allocation3] sm:$0xff] (!%p357_p10), %vm196_vm0, %v544_v1 }
  0x3b   : > { %s187_s17 = scalar_lea.vmem %s725_s1, %s355_s5  ;;  %s690_s24 = scalar_lea.vmem %s726_s2, %s355_s5  ;;  %199 = vst.msk [vmem:[#allocation4] sm:$0xff] (!%p357_p10), %vm196_vm0, %v544_v1 }
  0x40 PF: > { %v202_v2 = vlaneseq  ;;  %s358_s13 = sshll.u32 %s524_s12, 7  ;;  %v200_v5 = vld [vmem:[%s160_s20] sm:$0xff]  ;;  %v545_v8 = vmov 0   ;;  %vm229_vm2 = vcmask 7168   ;;  %p359_p7 = scmp.ne.s32.totalorder %s524_s12, 1 }
  0x41   : > { %v205_v3 = vstv %s358_s13  ;;  %436 = vset.pattern.permute.xlu0 %v545_v8  ;;  %437 = vset.pattern.permute.xlu1 %v545_v8  ;;  %v201_v9 = vld [vmem:[%s187_s17] sm:$0xff]  ;;  %v216_v22 = vld [vmem:[#allocation3] sm:$0xff] }
  0x42   : > { %v203_v4 = vand.u32 127, %v202_v2  ;;  %233 = vperm.xlu1 %437, %v201_v9   ;;  %v209_v10 = vld [vmem:[#allocation2] sm:$0xff]  ;;  %v236_v26 = vld [vmem:[#allocation4] sm:$0xff]  ;;  %vm251_vm4 = vcmp.ne.s32.totalorder (!%p359_p7), %v201_v9, 4294967196 }
  0x44   : > { %v206_v6 = vadd.s32 %v205_v3, %v203_v4 }
  0x46   : > { %vm207_vm1 = vcmp.lt.s32.totalorder %v206_v6, 256 }
  0x47   : > { %v208_v7 = vsel %vm207_vm1, %v200_v5, -inf }
  0x48   : > { %210 = vmax.xlane.f32.xlu0 %v208_v7 }
  0xc1   : > { %v234_v17 = vpop.permute.xlu1 %233 }
  0xc2   : > { %vm235_vm3 = vcmp.eq.s32.totalorder %v206_v6, %v234_v17 }
  0xc3   : > { %v237_v19 = vsel %vm235_vm3, %v208_v7, 0.0 }
  0xd5   : > { %v211_v11 = vpop.xlane.xlu0 %210 }
  0xd6   : > { %v212_v12 = vmax.f32 %v209_v10, %v211_v11 }
  0xd8   : > { %v213_v13 = vsub.f32 %v209_v10, %v212_v12  ;;  %231 = vst.msk [vmem:[#allocation2] sm:$0xff] %vm229_vm2, %v212_v12  ;;  %220 = vperm.xlu0 %436, %v212_v12  }
  0xda   : > { %v214_v20 = vmul.f32 1.442695, %v213_v13 }
  0xdf   : > { %v246_v31 = vld [vmem:[#allocation2] sm:$0xff] (!%p359_p7) }
 0x157   : > { %v221_v14 = vpop.permute.xlu0 %220 }
 0x158   : > { %v223_v15 = vsub.f32 %v208_v7, %v221_v14 }
 0x15a   : > { %v224_v16 = vmul.f32 1.442695, %v223_v15 }
 0x15c   : > { %438 = vpow2.f32 %v224_v16 }
 0x15d   : > { %440 = vpow2.f32 %v214_v20 }
 0x166   : > { %v439_v18 = vpop.eup %438 }
 0x167   : > { %226 = vadd.xlane.f32.xlu1 %v439_v18  ;;  %v441_v21 = vpop.eup %440 }
 0x168   : > { %v217_v23 = vmul.f32 %v441_v21, %v216_v22 }
 0x16b   : > { %238 = vadd.xlane.f32.xlu1 %v237_v19 }
 0x1f4   : > { %v227_v24 = vpop.xlane.xlu1 %226 }
 0x1f5   : > { %v228_v25 = vadd.f32 %v227_v24, %v217_v23  ;;  %245 = sbr.rel (%p359_p7) target bundleno = 530 (0x212), region = 40 }
 0x1f7   : > { %230 = vst.msk [vmem:[#allocation3] sm:$0xff] %vm229_vm2, %v228_v25 }
 0x1f8   : > { %v239_v27 = vpop.xlane.xlu1 %238 }
 0x1f9   : > { %v240_v28 = vadd.f32 %v239_v27, %v236_v26 }
 0x1fb   : > { %241 = vst.msk [vmem:[#allocation4] sm:$0xff] %vm229_vm2, %v240_v28 }
 0x1fe   : > { %v247_v29 = vld [vmem:[#allocation3] sm:$0xff] }
 0x1ff   : > { %442 = vlog2.f32 %v247_v29 }
 0x202   : > { %v252_v33 = vld [vmem:[#allocation4] sm:$0xff] }
 0x209   : > { %v443_v30 = vpop.eup %442 }
 0x20a   : > { %v249_v32 = vmul.f32 0.6931472, %v443_v30 }
 0x20c   : > { %v250_v34 = vadd.f32 %v249_v32, %v246_v31 }
 0x20e   : > { %v253_v35 = vsub.f32 %v250_v34, %v252_v33 }
 0x210   : > { %v254_v36 = vsel %vm251_vm4, %v253_v35, 0.0 }
 0x211   : > { %255 = vst.msk [vmem:[%s690_s24] sm:$0xff] %vm229_vm2, %v254_v36 }
 0x212 PF: > { %s15_s16 = sadd.s32 1, %s540_s16   ;;  %s732_s9 = smov %s516_s10 }
 0x213   : > { %p12_p12 = scmp.ge.s32.totalorder %s15_s16, 6   ;;  %s733_s10 = smov %s520_s11 }
 0x214   : > { %s734_s11 = smov %s628_s29  ;;  %s735_s12 = smov %s532_s14 }
 0x215   : > { %s736_s13 = smov %s536_s15  ;;  %s737_s14 = smov %s740_s18 }
 0x216   : > { %s738_s15 = smov %s744_s19  ;;  %14 = sbr.rel (!%p12_p12) target bundleno = 5 (0x5), region = 79 }
 0x21d   :  { %275 = vsyncpa [#allocation6], 1 }
 0x21e   :  { %277 = vsyncpa [#allocation6 + $0x1], 1 }

</bundles_post_ra>
